<compile_context>
chip_gen: v6e
topology: v6e:2x2x1
jax: 0.10.0
libtpu: 0.0.40
codegen_flags: <defaults>
</compile_context>

<pallas_src>
import math

import jax
import jax.numpy as jnp
from jax.experimental import pallas as pl
from jax.experimental.pallas import tpu as pltpu


def _pick_tile(n, cap, align):
    """Largest divisor t of n with t <= cap and t % align == 0; else full n."""
    if n <= cap:
        return n
    for t in range(cap, align - 1, -1):
        if n % t == 0 and t % align == 0:
            return t
    return n


def _gcn_kernel(x_ref, adj_ref, w_ref, b_ref, o_ref, acc_ref):
    # Shapes (batch dim squeezed out by BlockSpec):
    #   x_ref:   (tk, F_in)    adj_ref: (tm, tk)
    #   w_ref:   (F_in, F_out) b_ref:   (1, F_out)   (f32, resident)
    #   o_ref:   (tm, F_out)   acc_ref: (tm, F_out)  f32 scratch
    k = pl.program_id(2)

    @pl.when(k == 0)
    def _init():
        acc_ref[...] = jnp.zeros_like(acc_ref)

    # h_k = x_k @ W - bias  (MXU, f32 accumulate; bias subtract in f32).
    h = jnp.dot(x_ref[...], w_ref[...], preferred_element_type=jnp.float32)
    h = h - b_ref[...]

    # acc += adj_{i,k} @ h_k  (f32 accumulator across the contraction tiles).
    acc_ref[...] += jnp.dot(adj_ref[...], h.astype(adj_ref.dtype),
                            preferred_element_type=jnp.float32)

    @pl.when(k == pl.num_programs(2) - 1)
    def _finalize():
        o_ref[...] = jnp.maximum(acc_ref[...], 0.0).astype(o_ref.dtype)


def graph_convolution(x, adj, weight, bias=None, *, matmul_dtype=None):
    B, N, f_in = x.shape
    f_out = weight.shape[1]
    assert adj.shape == (B, N, N)
    assert weight.shape == (f_in, f_out)

    # Bias as a 2-D (1, F_out) f32 row, broadcast inside the kernel.
    if bias is None:
        b2d = jnp.zeros((1, f_out), jnp.float32)
    else:
        assert bias.shape == (1, 1, f_out)
        b2d = bias.reshape(1, f_out).astype(jnp.float32)

    # Optional bf16 MXU inputs (halves adj HBM traffic); f32 accumulation.
    if matmul_dtype is not None:
        x = x.astype(matmul_dtype)
        adj = adj.astype(matmul_dtype)
        weight = weight.astype(matmul_dtype)
    mm_dtype = x.dtype

    # Row tile (sublane-aligned) and contraction tile (lane-aligned).
    tm = _pick_tile(N, 256, 8)
    tk = _pick_tile(N, 512, 128)
    grid = (B, N // tm, N // tk)

    itemsize = jnp.dtype(mm_dtype).itemsize
    cost = pl.CostEstimate(
        flops=2 * B * N * f_out * (f_in + N),
        transcendentals=0,
        bytes_accessed=itemsize * (B * N * f_in + B * N * N + f_in * f_out)
        + 4 * (f_out + B * N * f_out),
    )

    grid_spec = pltpu.PrefetchScalarGridSpec(
        num_scalar_prefetch=0,
        grid=grid,
        in_specs=[
            # x: contraction-tile rows, full F_in.
            pl.BlockSpec((pl.Squeezed(), tk, f_in), lambda b, i, k: (b, k, 0)),
            # adj: (row-tile, contraction-tile) block; double-buffered stream.
            pl.BlockSpec((pl.Squeezed(), tm, tk), lambda b, i, k: (b, i, k)),
            # W, bias: constant block index -> VMEM-resident across the grid.
            pl.BlockSpec((f_in, f_out), lambda b, i, k: (0, 0)),
            pl.BlockSpec((1, f_out), lambda b, i, k: (0, 0)),
        ],
        out_specs=pl.BlockSpec((pl.Squeezed(), tm, f_out),
                               lambda b, i, k: (b, i, 0)),
        scratch_shapes=[pltpu.VMEM((tm, f_out), jnp.float32)],
    )

    return pl.pallas_call(
        _gcn_kernel,
        out_shape=jax.ShapeDtypeStruct((B, N, f_out), jnp.float32),
        grid_spec=grid_spec,
        compiler_params=pltpu.CompilerParams(
            dimension_semantics=("parallel", "parallel", "arbitrary"),
            vmem_limit_bytes=32 * 1024 * 1024,
        ),
        cost_estimate=cost,
    )(x, adj, weight, b2d)


def init_params(key, in_features, out_features, gain=1.414):
    # xavier_uniform_ with gain: bound = gain * sqrt(6 / (fan_in + fan_out))
    bound = gain * math.sqrt(6.0 / (in_features + out_features))
    weight = jax.random.uniform(
        key, (in_features, out_features), dtype=jnp.float32,
        minval=-bound, maxval=bound,
    )
    bias = jnp.zeros((1, 1, out_features), dtype=jnp.float32)
    return weight, bias


def _reference(x, adj, weight, bias):
    h = jnp.matmul(x, weight) - bias
    return jax.nn.relu(jnp.matmul(adj, h))


if __name__ == "__main__":
    key = jax.random.PRNGKey(0)
    k_x, k_adj, k_w, k_b = jax.random.split(key, 4)

    B, N = 2, 16
    in_features, out_features = 32, 32

    x = jax.random.normal(k_x, (B, N, in_features), dtype=jnp.float32)
    # Row-normalized random adjacency (dense), like a typical GCN propagation matrix.
    adj_raw = jax.random.uniform(k_adj, (B, N, N), dtype=jnp.float32)
    adj = adj_raw / jnp.sum(adj_raw, axis=-1, keepdims=True)

    weight, bias_zero = init_params(k_w, in_features, out_features)
    # Also exercise the bias path with nonzero values (reset_parameters() can
    # make the module's bias nonzero).
    bias_nonzero = 0.1 * jax.random.normal(
        k_b, (1, 1, out_features), dtype=jnp.float32)

    # f32 path: bit-exact-ish vs reference.
    for b in (bias_zero, bias_nonzero):
        out = graph_convolution(x, adj, weight, b)
        jax.block_until_ready(out)
        ref = _reference(x, adj, weight, b)
        assert out.shape == (B, N, out_features)
        assert jnp.allclose(out, ref, atol=1e-4, rtol=1e-4)

    # bf16 MXU-input path (the big throughput lever at production sizes).
    out_bf16 = graph_convolution(x, adj, weight, bias_nonzero,
                                 matmul_dtype=jnp.bfloat16)
    jax.block_until_ready(out_bf16)
    ref = _reference(x, adj, weight, bias_nonzero)
    assert out_bf16.shape == (B, N, out_features)
    assert jnp.allclose(out_bf16, ref, atol=5e-2, rtol=5e-2)

    print("KERNEL_OK")
</pallas_src>

<mosaic_0001>
module attributes {stable_mosaic.version = 11 : i64} {
  func.func @_gcn_kernel(%arg0: i32, %arg1: i32, %arg2: i32, %arg3: memref<1x16x32xf32, #tpu.memory_space<vmem>>, %arg4: memref<1x16x16xf32, #tpu.memory_space<vmem>>, %arg5: memref<32x32xf32, #tpu.memory_space<vmem>>, %arg6: memref<1x32xf32, #tpu.memory_space<vmem>>, %arg7: memref<1x16x32xf32, #tpu.memory_space<vmem>>, %arg8: memref<16x32xf32, #tpu.memory_space<vmem>>) attributes {dimension_semantics = [#tpu.dimension_semantics<parallel>, #tpu.dimension_semantics<parallel>, #tpu.dimension_semantics<arbitrary>], iteration_bounds = array<i64: 2, 1, 1>, scalar_prefetch = 0 : i64, scratch_operands = 1 : i64, tpu.core_type = #tpu.core_type<tc>, window_params = [{transform_indices = @transform_0, window_bounds = array<i64: 1, 16, 32>}, {transform_indices = @transform_1, window_bounds = array<i64: 1, 16, 16>}, {pipeline_mode = #tpu.pipeline_mode<synchronous>, transform_indices = @transform_2, window_bounds = array<i64: 32, 32>}, {pipeline_mode = #tpu.pipeline_mode<synchronous>, transform_indices = @transform_3, window_bounds = array<i64: 1, 32>}, {transform_indices = @transform_4, window_bounds = array<i64: 1, 16, 32>}]} {
    %c0_i32 = arith.constant 0 : i32
    %0 = arith.cmpi eq, %arg2, %c0_i32 : i32
    %1 = arith.extui %0 : i1 to i32
    %c0_i32_0 = arith.constant 0 : i32
    %2 = arith.cmpi ne, %1, %c0_i32_0 : i32
    scf.if %2 {
      %cst_17 = arith.constant 0.000000e+00 : f32
      %19 = vector.broadcast %cst_17 : f32 to vector<16x32xf32>
      %c0_18 = arith.constant 0 : index
      %c0_19 = arith.constant 0 : index
      %20 = vector.load %arg8[%c0_18, %c0_19] : memref<16x32xf32, #tpu.memory_space<vmem>>, vector<16x32xf32>
      tpu.vector_store %arg8[%c0_18, %c0_19], %19 {strides = array<i32>} : memref<16x32xf32, #tpu.memory_space<vmem>>, vector<16x32xf32>,
    } else {
    }
    %c0 = arith.constant 0 : index
    %c0_1 = arith.constant 0 : index
    %c0_2 = arith.constant 0 : index
    %3 = vector.load %arg3[%c0, %c0_1, %c0_2] : memref<1x16x32xf32, #tpu.memory_space<vmem>>, vector<1x16x32xf32>
    %4 = vector.shape_cast %3 : vector<1x16x32xf32> to vector<16x32xf32>
    %c0_3 = arith.constant 0 : index
    %c0_4 = arith.constant 0 : index
    %5 = vector.load %arg5[%c0_3, %c0_4] : memref<32x32xf32, #tpu.memory_space<vmem>>, vector<32x32xf32>
    %cst = arith.constant dense<0.000000e+00> : vector<16x32xf32>
    %6 = tpu.matmul %4, %5, %cst {dimension_numbers = #tpu.dot_dimension_numbers<[1], [0], [0], [1], [0, 0, 1, 1], [], []>} : vector<16x32xf32>, vector<32x32xf32>, vector<16x32xf32> -> vector<16x32xf32>
    %c0_5 = arith.constant 0 : index
    %c0_6 = arith.constant 0 : index
    %7 = vector.load %arg6[%c0_5, %c0_6] : memref<1x32xf32, #tpu.memory_space<vmem>>, vector<1x32xf32>
    %8 = vector.broadcast %7 : vector<1x32xf32> to vector<16x32xf32>
    %9 = arith.subf %6, %8 : vector<16x32xf32>
    %c0_7 = arith.constant 0 : index
    %c0_8 = arith.constant 0 : index
    %10 = vector.load %arg8[%c0_7, %c0_8] : memref<16x32xf32, #tpu.memory_space<vmem>>, vector<16x32xf32>
    %c0_9 = arith.constant 0 : index
    %c0_10 = arith.constant 0 : index
    %c0_11 = arith.constant 0 : index
    %11 = vector.load %arg4[%c0_9, %c0_10, %c0_11] : memref<1x16x16xf32, #tpu.memory_space<vmem>>, vector<1x16x16xf32>
    %12 = vector.shape_cast %11 : vector<1x16x16xf32> to vector<16x16xf32>
    %cst_12 = arith.constant dense<0.000000e+00> : vector<16x32xf32>
    %13 = tpu.matmul %12, %9, %cst_12 {dimension_numbers = #tpu.dot_dimension_numbers<[1], [0], [0], [1], [0, 0, 1, 1], [], []>} : vector<16x16xf32>, vector<16x32xf32>, vector<16x32xf32> -> vector<16x32xf32>
    %14 = arith.addf %10, %13 : vector<16x32xf32>
    %c0_13 = arith.constant 0 : index
    %c0_14 = arith.constant 0 : index
    %15 = vector.load %arg8[%c0_13, %c0_14] : memref<16x32xf32, #tpu.memory_space<vmem>>, vector<16x32xf32>
    tpu.vector_store %arg8[%c0_13, %c0_14], %14 {strides = array<i32>} : memref<16x32xf32, #tpu.memory_space<vmem>>, vector<16x32xf32>,
    %c0_i32_15 = arith.constant 0 : i32
    %16 = arith.cmpi eq, %arg2, %c0_i32_15 : i32
    %17 = arith.extui %16 : i1 to i32
    %c0_i32_16 = arith.constant 0 : i32
    %18 = arith.cmpi ne, %17, %c0_i32_16 : i32
    scf.if %18 {
      %c0_17 = arith.constant 0 : index
      %c0_18 = arith.constant 0 : index
      %19 = vector.load %arg8[%c0_17, %c0_18] : memref<16x32xf32, #tpu.memory_space<vmem>>, vector<16x32xf32>
      %cst_19 = arith.constant 0.000000e+00 : f32
      %20 = vector.broadcast %cst_19 : f32 to vector<16x32xf32>
      %21 = arith.maximumf %19, %20 : vector<16x32xf32>
      %c0_20 = arith.constant 0 : index
      %c0_21 = arith.constant 0 : index
      %c0_22 = arith.constant 0 : index
      %22 = vector.load %arg7[%c0_20, %c0_21, %c0_22] : memref<1x16x32xf32, #tpu.memory_space<vmem>>, vector<1x16x32xf32>
      %23 = vector.shape_cast %22 : vector<1x16x32xf32> to vector<16x32xf32>
      %24 = vector.shape_cast %21 : vector<16x32xf32> to vector<1x16x32xf32>
      tpu.vector_store %arg7[%c0_20, %c0_21, %c0_22], %24 {strides = array<i32>} : memref<1x16x32xf32, #tpu.memory_space<vmem>>, vector<1x16x32xf32>,
    } else {
    }
    return
  }
  func.func @transform_0(%arg0: i32, %arg1: i32, %arg2: i32) -> (i32, i32, i32) {
    %c0_i32 = arith.constant 0 : i32
    %c0_i32_0 = arith.constant 0 : i32
    return %arg0, %arg2, %c0_i32 : i32, i32, i32
  }
  func.func @transform_1(%arg0: i32, %arg1: i32, %arg2: i32) -> (i32, i32, i32) {
    %c0_i32 = arith.constant 0 : i32
    return %arg0, %arg1, %arg2 : i32, i32, i32
  }
  func.func @transform_2(%arg0: i32, %arg1: i32, %arg2: i32) -> (i32, i32) {
    %c0_i32 = arith.constant 0 : i32
    %c0_i32_0 = arith.constant 0 : i32
    %c0_i32_1 = arith.constant 0 : i32
    return %c0_i32, %c0_i32_0 : i32, i32
  }
  func.func @transform_3(%arg0: i32, %arg1: i32, %arg2: i32) -> (i32, i32) {
    %c0_i32 = arith.constant 0 : i32
    %c0_i32_0 = arith.constant 0 : i32
    %c0_i32_1 = arith.constant 0 : i32
    return %c0_i32, %c0_i32_0 : i32, i32
  }
  func.func @transform_4(%arg0: i32, %arg1: i32, %arg2: i32) -> (i32, i32, i32) {
    %c0_i32 = arith.constant 0 : i32
    %c0_i32_0 = arith.constant 0 : i32
    return %arg0, %arg1, %c0_i32 : i32, i32, i32
  }
}

</mosaic_0001>

<bundles_post_ra>
// kernel: tpu_custom_call.1
= control target key start
LH: loop header
LB: loop body
LE: loop exit
PB: predicated region body
PF: predicated region fallthrough
CT: control target
= control target key end

     0   :  { %s1222_s0 = inlined_call_operand.hbm [shape: f32[2,16,32], index: 0, kind: input, shape index: {}]   ;;  %s1223_s1 = inlined_call_operand.hbm [shape: f32[2,16,16], index: 1, kind: input, shape index: {}]   ;;  %s1224_s2 = inlined_call_operand.hbm [shape: f32[32,32], index: 2, kind: input, shape index: {}]   ;;  %s1225_s3 = inlined_call_operand.vmem [shape: f32[1,32], index: 3, kind: input, shape index: {}]   ;;  %s1226_s4 = inlined_call_operand.hbm [shape: f32[2,16,32], index: 4, kind: output, shape index: {}]  }
   0x1   :  { %1233 = sst [smem:[#allocation16_spill]] %s1224_s2 }
   0x2   :  { %9 = vsyncpa [#allocation4], 0 }
   0x3   :  { %11 = vsyncpa [#allocation4 + $0x1], 0 }
   0x4   :  { %12 = vsyncpa [#allocation7], 0 }
   0x5   :  { %14 = vsyncpa [#allocation7 + $0x1], 0 }
   0x6   :  { %15 = vsyncpa [#allocation5], 0 }
   0x7   :  { %17 = vsyncpa [#allocation5 + $0x1], 0  ;;  %s996_s15 = smov 0   ;;  %s998_s16 = smov 0  }
   0x8   :  { %s1000_s17 = smov 0   ;;  %s1002_s18 = smov 0  }
   0x9   :  { %s1004_s19 = smov 0   ;;  %s1006_s20 = smov 0  }
   0xa LB: > { %1234 = sst [smem:[#allocation14_spill]] %s956_s19  ;;  %s1027_s21 = sadd.s32 4294967295, %s960_s20   ;;  %s960_s20 = sphi %s1006_s20, %s23_s20   ;;  %s956_s19 = sphi %s1004_s19, %s1250_s19   ;;  %s952_s18 = sphi %s1002_s18, %s1249_s18   ;;  %s948_s17 = sphi %s1000_s17, %s1253_s17   ;;  %s944_s16 = sphi %s998_s16, %s1252_s16   ;;  %s940_s15 = sphi %s996_s15, %s1251_s15  }
   0xb   : > { %s651_s22 = sadd.s32 4294967294, %s960_s20   ;;  %p64_p0 = scmp.ne.s32.totalorder %s944_s16, %s940_s15 }
   0xc   : > { %p65_p1 = scmp.eq.s32.totalorder %s1027_s21, 0  ;;  %p168_p3 = scmp.eq.s32.totalorder %s651_s22, 1 }
   0xd   : > { %p652_p5 = scmp.ge.s32.totalorder %s960_s20, 1  ;;  %p175_p7 = scmp.lt.s32.totalorder %s960_s20, 3 }
   0xe   : > { %p1036_p4 = por %p65_p1, %p64_p0  ;;  %p1041_p6 = por %p168_p3, %p64_p0 }
   0xf   : > { %p1046_p8 = pnand %p652_p5, %p175_p7  ;;  %s962_s26 = smov [#allocation8]  }
  0x10   : > { %s1236_s24 = scalar_select %p1041_p6, 1, 0 }
  0x11   : > { %s187_s27 = sshll.u32 %s962_s26, 4  ;;  %p717_p9 = pneg %p1046_p8  ;;  %s188_s27 = int_to_ptr.vmem [resolvable:$true] %s187_s27 }
  0x12   : > { %s42_s29 = sadd.s32 1, %s956_s19  ;;  %s801_s30 = scalar_lea.vmem %s188_s27, 512 }
  0x13   : > { %p1055_p11 = pnand %p717_p9, %p65_p1  ;;  %p802_p13 = scmp.ne.s32.totalorder %s188_s27, %s801_s30 }
  0x14   : > { %p809_p5 = scmp.lt.s32.totalorder %s188_s27, %s188_s27  ;;  %p810_p7 = scmp.lt.s32.totalorder %s801_s30, %s801_s30 }
  0x15   : > { %p792_p12 = pneg %p1055_p11 }
  0x16   : > { %p811_p2 = por %p810_p7, %p809_p5 }
  0x17   : > { %p804_p0 = pnand %p802_p13, %p792_p12 }
  0x19   : > { %p805_p3 = pneg %p804_p0 }
  0x1b   : > { %p812_p6 = pnand %p811_p2, %p805_p3 }
  0x1d   : > { %815 = shalt.err (!%p812_p6)
}
  0x1e   : > { %s1227_s5 = smov 128   ;;  %s1229_s6 = smov 8  }
  0x1f   : > { %s1239_s2 = sld [smem:[#allocation16_spill]]  ;;  %p44_p2 = scmp.ge.s32.totalorder %s42_s29, 2 }
  0x20   : > { %s51_s9 = sadd.s32 1, %s948_s17  ;;  %p58_p6 = scmp.ne.s32.totalorder %s948_s17, %s944_s16 }
  0x21   : > { %p59_p9 = scmp.eq.s32.totalorder %s960_s20, 0  ;;  %s1255_s29 = smov (%p44_p2, %s42_s29), 0 }
  0x22   : > { %1240 = sst [smem:[#allocation15_spill]] %s1255_s29  ;;  %p1242_p13 = scmp.eq.s32.totalorder %s1027_s21, 1 }
  0x23   : > { %p1076_p12 = por %p59_p9, %p58_p6  ;;  %s46_s12 = ssub.s32 %s956_s19, %s1255_s29 }
  0x24   : > { %p1082_p0 = por %p1242_p13, %p58_p6  ;;  %p733_p3 = scmp.lt.s32.totalorder %s960_s20, 2 }
  0x25   : > { %720 = dma.hbm_to_vmem [thread:$0]  (!%p1055_p11), %s1239_s2, 512, %s188_s27, [#allocation7], %s1227_s5, %s1227_s5, %s1229_s6  }
  0x26   : > { %p49_p11 = scmp.eq.s32.totalorder %s46_s12, 0  ;;  %s204_s13 = sand.u32 1, %s948_s17  }
  0x27   : > { %s655_s14 = sshll.u32 %s204_s13, 4  ;;  %s676_s26 = sshll.u32 %s956_s19, 8 }
  0x28   : > { %s1091_s22 = scalar_select %p49_p11, %s948_s17, %s51_s9  }
  0x29   : > { %s216_s30 = scalar_lea.hbm %s1222_s0, %s676_s26  ;;  %s208_s7 = scalar_lea.vmem [#allocation3], %s655_s14 }
  0x2a   : > { %s217_s8 = sshll.u32 %s208_s7, 4  ;;  %p1099_p5 = pnand %p733_p3, %p1076_p12  ;;  %s218_s8 = int_to_ptr.vmem [resolvable:$true] %s217_s8 }
  0x2b   : > { %s1106_s9 = scalar_lea.hbm %s1223_s1, %s676_s26  ;;  %s231_s12 = scalar_lea.vmem [#allocation6], %s655_s14 }
  0x2c   : > { %s241_s29 = sshll.u32 %s231_s12, 4  ;;  %s205_s19 = scalar_lea.sflag [#allocation4], %s204_s13  ;;  %s242_s29 = int_to_ptr.vmem [resolvable:$true] %s241_s29 }
  0x2d   : > { %p818_p7 = pneg %p1099_p5  ;;  %s829_s27 = scalar_lea.vmem %s218_s8, 256 }
  0x2e   : > { %p830_p2 = scmp.ne.s32.totalorder %s218_s8, %s829_s27  ;;  %s965_s10 = smov [#allocation3]  }
  0x2f   : > { %s834_s28 = sshll.u32 %s965_s10, 4  ;;  %s835_s28 = int_to_ptr.vmem [resolvable:$false] %s834_s28 }
  0x30   : > { %p832_p6 = pnand %p830_p2, %p818_p7  ;;  %s836_s7 = scalar_lea.vmem %s835_s28, 512 }
  0x31   : > { %p837_p12 = scmp.lt.s32.totalorder %s218_s8, %s835_s28  ;;  %p838_p13 = scmp.lt.s32.totalorder %s836_s7, %s829_s27 }
  0x32   : > { %p833_p9 = pneg %p832_p6 }
  0x33   : > { %p839_p3 = por %p838_p13, %p837_p12 }
  0x35   : > { %p840_p11 = pnand %p839_p3, %p833_p9 }
  0x37   : > { %843 = shalt.err (!%p840_p11)
}
  0x38   : > { %s1245_s2 = smov 8   ;;  %s1246_s6 = smov 128  }
  0x39   : > { %724 = dma.hbm_to_vmem [thread:$0]  (!%p1099_p5), %s216_s30, 256, %s218_s8, %s205_s19, %s1246_s6, %s1246_s6, %s1245_s2  }
  0x3a   : > { %s227_s13 = sand.u32 1, %s960_s20   ;;  %s857_s26 = scalar_lea.vmem %s242_s29, 256 }
  0x3b   : > { %s228_s14 = scalar_lea.sflag [#allocation7], %s227_s13  ;;  %p858_p2 = scmp.ne.s32.totalorder %s242_s29, %s857_s26 }
  0x3c   : > { %s966_s12 = smov [#allocation6]  }
  0x3d   : > { %p860_p6 = pnand %p858_p2, %p818_p7  ;;  %s862_s27 = sshll.u32 %s966_s12, 4  ;;  %s863_s27 = int_to_ptr.vmem [resolvable:$false] %s862_s27 }
  0x3e   : > { %s864_s10 = scalar_lea.vmem %s863_s27, 512  ;;  %p865_p9 = scmp.lt.s32.totalorder %s242_s29, %s863_s27 }
  0x3f   : > { %p861_p10 = pneg %p860_p6  ;;  %p866_p12 = scmp.lt.s32.totalorder %s864_s10, %s857_s26 }
  0x41   : > { %p867_p13 = por %p866_p12, %p865_p9 }
  0x43   : > { %p868_p3 = pnand %p867_p13, %p861_p10 }
  0x45   : > { %871 = shalt.err (!%p868_p3)
}
  0x46   : > { %727 = dma.hbm_to_vmem [thread:$0]  (!%p1099_p5), %s1106_s9, 256, %s242_s29, %s228_s14, %s1246_s6, %s1246_s6, %s1245_s2  }
  0x47   : > { %253 = sbr.rel (%p1046_p8) target bundleno = 511 (0x1ff), region = 36  ;;  %s1131_s19 = sand.u32 (!%p1046_p8), 1, %s944_s16  }
  0x48   : > { %s1134_s30 = sshll.u32 (!%p1046_p8), %s1131_s19, 4  ;;  %s256_s8 = scalar_lea.sflag (!%p1046_p8), [#allocation4], %s1131_s19 }
  0x49   : > { %s259_s28 = scalar_lea.vmem (!%p1046_p8), [#allocation3], %s1134_s30 }
  0x4c   : > { %923 = dma.done.wait (%p1036_p4), %s256_s8, 256  }
  0x4d   : > { %925 = vsyncadd (%p1036_p4), %s256_s8, 4294967040  ;;  %s264_s25 = sand.u32 1, %s1027_s21   ;;  %s268_s5 = scalar_lea.vmem [#allocation6], %s1134_s30 }
  0x4e   : > { %s265_s29 = scalar_lea.sflag [#allocation7], %s264_s25 }
  0x4f   : > { %927 = dma.done.wait (%p1036_p4), %s265_s29, 256  }
  0x50   : > { %929 = vsyncadd (%p1036_p4), %s265_s29, 4294967040 }
  0x51   : > { %931 = dma.done.wait (%p65_p1), [#allocation7], 512  }
  0x52   : > { %933 = vsyncadd (%p65_p1), [#allocation7], 4294966784  ;;  %vm309_vm0 = vcmask 261120   ;;  %v317_v0 = vld [vmem:[#allocation8 + $0x18] sm:$0xff]  ;;  %v316_v1 = vld [vmem:[#allocation8 + $0x10] sm:$0xff]  ;;  %vm413_vm1 = vcmask 130048  }
  0x53   : > { %689 = vmatprep.subr.mxu0 %v317_v0  ;;  %v312_v2 = vld [vmem:[%s259_s28] sm:$0xff]  ;;  %v315_v3 = vld [vmem:[#allocation8 + $0x8] sm:$0xff]  ;;  %v967_v7 = vmov 0.0   ;;  %s678_s9 = sshll.u32 %s952_s18, 8  ;;  %s301_s7 = scalar_lea.vmem [#allocation9], %s1134_s30 }
  0x54   : > { %690 = vmatpush3.msra.mxu0 %v317_v0  ;;  %697 = vmatprep.mubr.msk.f32.mxu0 %vm309_vm0, %v312_v2  ;;  %v314_v4 = vld [vmem:[#allocation8] sm:$0xff]  ;;  %v313_v5 = vld [vmem:[%s259_s28 + $0x8] sm:$0xff]  ;;  %311 = vst.msk [vmem:[#allocation2 + $0x8] sm:$0xff] %vm309_vm0, %v967_v7  ;;  %310 = vst.msk [vmem:[#allocation2] sm:$0xff] %vm309_vm0, %v967_v7  ;;  %s524_s2 = sshll.u32 %s301_s7, 4  ;;  %s1170_s14 = scalar_lea.hbm %s1226_s4, %s678_s9  ;;  %s1172_s2 = int_to_ptr.vmem [resolvable:$true] %s524_s2 }
  0x55   : > { %691 = vmatprep.subr.mxu0 %v316_v1  ;;  %v411_v6 = vld [vmem:[%s268_s5] sm:$0xff]  ;;  %v412_v13 = vld [vmem:[%s268_s5 + $0x8] sm:$0xff]  ;;  %s509_s18 = scalar_lea.sflag [#allocation5], %s1131_s19  ;;  %s872_s26 = scalar_lea.vmem %s1172_s2, 256 }
  0x56   : > { %692 = vmatpush3.msra.mxu0 %v316_v1  ;;  %704 = vmatprep.mubr.msk.f32.mxu1 %vm413_vm1, %v411_v6  ;;  %v668_v8 = vld [vmem:[%s1225_s3] ss:$0 sm:$0xff]  ;;  %p873_p1 = scmp.ne.s32.totalorder %s1172_s2, %s872_s26  ;;  %s968_s12 = smov [#allocation9]  }
  0x57   : > { %693 = vmatprep.subr.mxu0 %v315_v3  ;;  %s876_s27 = sshll.u32 %s968_s12, 4  ;;  %s877_s27 = int_to_ptr.vmem [resolvable:$false] %s876_s27 }
  0x58   : > { %694 = vmatpush3.msra.mxu0 %v315_v3  ;;  %p874_p4 = pnand %p873_p1, %p1082_p0  ;;  %s878_s10 = scalar_lea.vmem %s877_s27, 512 }
  0x59   : > { %695 = vmatprep.subr.mxu0 %v314_v4  ;;  %p879_p10 = scmp.lt.s32.totalorder %s1172_s2, %s877_s27  ;;  %p880_p5 = scmp.lt.s32.totalorder %s878_s10, %s872_s26 }
  0x5a   : > { %696 = vmatpush3.msra.mxu0 %v314_v4  ;;  %p875_p8 = pneg %p874_p4 }
  0x5b   : > { %698 = vmatmul.mubr.msk.f32.vlgmr.msra.gmra.mxu0 %vm309_vm0, %v313_v5  ;;  %v410_v14 = vld [vmem:[#allocation2 + $0x8] sm:$0xff]  ;;  %v409_v16 = vld [vmem:[#allocation2] sm:$0xff]  ;;  %p881_p7 = por %p880_p5, %p879_p10 }
  0x5d   : > { %p882_p11 = pnand %p881_p7, %p875_p8 }
 0x11b   : > { %v699_v9 = vpop.f32.mrf.mxu0 }
 0x11c   : > { %v408_v10 = vsub.f32 %v699_v9, %v668_v8 }
 0x11d   : > { %v391_v11 = vpop.f32.mrf.mxu0 }
 0x11e   : > { %v407_v12 = vsub.f32 %v391_v11, %v668_v8  ;;  %700 = vmatprep.subr.mxu1 %v408_v10 }
 0x11f   : > { %701 = vmatpush3.msra.mxu1 %v408_v10 }
 0x120   : > { %702 = vmatprep.subr.mxu1 %v407_v12 }
 0x121   : > { %703 = vmatpush3.msra.mxu1 %v407_v12 }
 0x122   : > { %705 = vmatmul.mubr.msk.f32.vlgmr.msra.gmra.mxu1 %vm413_vm1, %v412_v13 }
 0x1e2   : > { %v706_v15 = vpop.f32.mrf.mxu1 }
 0x1e3   : > { %v496_v17 = vadd.f32 %v706_v15, %v410_v14 }
 0x1e4   : > { %v486_v18 = vpop.f32.mrf.mxu1 }
 0x1e5   : > { %498 = vst.msk [vmem:[#allocation2 + $0x8] sm:$0xff] %vm309_vm0, %v496_v17  ;;  %v495_v19 = vadd.f32 %v486_v18, %v409_v16 }
 0x1e7   : > { %497 = vst.msk [vmem:[#allocation2] sm:$0xff] %vm309_vm0, %v495_v19 }
 0x1ec   : > { %v503_v20 = vld [vmem:[#allocation2 + $0x8] sm:$0xff] }
 0x1ed   : > { %v505_v21 = vmax.f32 %v503_v20, 0.0 }
 0x1ee   : > { %v502_v22 = vld [vmem:[#allocation2] sm:$0xff] }
 0x1ef   : > { %v504_v23 = vmax.f32 %v502_v22, 0.0  ;;  %507 = vst.msk [vmem:[%s301_s7 + $0x8] sm:$0xff] %vm309_vm0, %v505_v21 }
 0x1f1   : > { %506 = vst.msk [vmem:[%s301_s7] sm:$0xff] %vm309_vm0, %v504_v23 }
 0x1f2   : > { %885 = shalt.err (!%p882_p11)
}
 0x1f3   : > { %s886_s30 = scalar_lea.hbm %s1170_s14, 256  ;;  %s890_s25 = scalar_lea.hbm %s1226_s4, 512 }
 0x1f4   : > { %p887_p2 = scmp.ne.s32.totalorder %s1170_s14, %s886_s30  ;;  %p891_p12 = scmp.lt.s32.totalorder %s1170_s14, %s1226_s4 }
 0x1f5   : > { %p892_p13 = scmp.lt.s32.totalorder %s890_s25, %s886_s30 }
 0x1f6   : > { %p888_p6 = pnand %p887_p2, %p1082_p0 }
 0x1f7   : > { %p893_p3 = por %p892_p13, %p891_p12 }
 0x1f8   : > { %p889_p9 = pneg %p888_p6 }
 0x1fa   : > { %p894_p1 = pnand %p893_p3, %p889_p9 }
 0x1fc   : > { %897 = shalt.err (!%p894_p1)
}
 0x1fd   : > { %s969_s21 = smov 128   ;;  %s970_s23 = smov 8  }
 0x1fe   : > { %715 = dma.vmem_to_hbm [thread:$0]  (%p1082_p0), %s1172_s2, 256, %s1170_s14, %s509_s18, %s969_s21, %s969_s21, %s970_s23  }
 0x1ff PF: > { %s539_s9 = sand.u32 1, %s940_s15   ;;  %p1247_p4 = scmp.ne.s32.totalorder %s1236_s24, 0 }
 0x200   : > { %p1248_p8 = scmp.ge.s32.totalorder %s960_s20, 2  ;;  %s540_s7 = scalar_lea.sflag [#allocation5], %s539_s9 }
 0x202   : > { %p729_p10 = pnand %p1248_p8, %p1247_p4 }
 0x204   : > { %p730_p5 = pneg %p729_p10 }
 0x206   : > { %935 = dma.done.wait (%p730_p5), %s540_s7, 256  }
 0x207   : > { %937 = vsyncadd (%p730_p5), %s540_s7, 4294967040  ;;  %s23_s20 = sadd.s32 1, %s960_s20   ;;  %s1249_s18 = sld [smem:[#allocation14_spill]] }
 0x208   : > { %p20_p7 = scmp.ge.s32.totalorder %s23_s20, 4   ;;  %s1250_s19 = sld [smem:[#allocation15_spill]] }
 0x209   : > { %s1251_s15 = smov %s944_s16  ;;  %s1252_s16 = smov %s948_s17 }
 0x20a   : > { %s1253_s17 = smov %s1091_s22  ;;  %22 = sbr.rel (!%p20_p7) target bundleno = 10 (0xa), region = 106 }
 0x20f   :  { %545 = vsyncpa [#allocation4], 1 }
 0x210   :  { %547 = vsyncpa [#allocation4 + $0x1], 1 }
 0x211   :  { %548 = vsyncpa [#allocation7], 1 }
 0x212   :  { %550 = vsyncpa [#allocation7 + $0x1], 1 }
 0x213   :  { %551 = vsyncpa [#allocation5], 1 }
 0x214   :  { %553 = vsyncpa [#allocation5 + $0x1], 1 }

</bundles_post_ra>
